<compile_context>
chip_gen: v6e
topology: v6e:2x2x1
jax: 0.10.0
libtpu: 0.0.40
codegen_flags: <defaults>
</compile_context>

<pallas_src>
import math
import numpy as np
import jax
import jax.numpy as jnp
from jax.experimental import pallas as pl
from jax.experimental.pallas import tpu as pltpu


def _round_up(x, m):
    return ((x + m - 1) // m) * m


# ----------------------------------------------------------------------------
# Parameter construction (mirrors MultiRes.__init__)
# ----------------------------------------------------------------------------
def multires_init(key, n_conv, n_out_channels, in_channel,
                  kernel_size_range, stride_range):
    if n_out_channels % n_conv != 0:
        raise Exception("Give Correct parameters")
    kernels = np.sort(np.linspace(kernel_size_range[0], kernel_size_range[1],
                                  n_conv, dtype=np.int32))[::-1]
    strides = np.sort(np.linspace(stride_range[0], stride_range[1],
                                  n_conv, dtype=np.int32))[::-1]
    kernels = [int(k) for k in kernels]
    strides = [int(s) for s in strides]
    c_per = n_out_channels // n_conv

    weights, biases = [], []
    for i in range(n_conv):
        key, kw, kb = jax.random.split(key, 3)
        fan_in = in_channel * kernels[i]
        bound = 1.0 / math.sqrt(fan_in)
        w = jax.random.uniform(kw, (c_per, in_channel, kernels[i]),
                               jnp.float32, minval=-bound, maxval=bound)
        b = jax.random.uniform(kb, (c_per,), jnp.float32,
                               minval=-bound, maxval=bound)
        weights.append(w)
        biases.append(b)
    return kernels, strides, weights, biases


# ----------------------------------------------------------------------------
# Pallas kernel: one branch = Conv1d (as matmul) + bias + ReLU + right-pad
# ----------------------------------------------------------------------------
def _make_branch_kernel(c_per, t_tile, t_valid):
    def kernel(x_ref, w_ref, b_ref, o_ref):
        # x_ref : (1, Cin*k, t_tile)  bf16   im2col tile
        # w_ref : (c_per, Cin*k)      bf16
        # b_ref : (c_per, 1)          f32
        # o_ref : (1, c_per, t_tile)
        t0 = pl.multiple_of(pl.program_id(1) * t_tile, t_tile)

        @pl.when(t0 < t_valid)
        def _():
            acc = jnp.dot(w_ref[...], x_ref[0],
                          preferred_element_type=jnp.float32)   # MXU contraction
            res = jnp.maximum(acc + b_ref[...], 0.0)             # bias + ReLU
            # Right zero-padding (F.pad semantics) done in registers -> one
            # unmasked lane-dense store.
            col = jax.lax.broadcasted_iota(jnp.int32, (c_per, t_tile), 1) + t0
            o_ref[0] = jnp.where(col < t_valid, res, 0.0).astype(o_ref.dtype)

        @pl.when(t0 >= t_valid)
        def _():
            # Tile entirely in the padded region: skip the matmul.
            o_ref[0] = jnp.zeros((c_per, t_tile), o_ref.dtype)

    return kernel


# ----------------------------------------------------------------------------
# Wrapper (im2col glue + gridded pallas_call per branch + concat)
# ----------------------------------------------------------------------------
def multires_forward(x, kernels, strides, weights, biases, t_tile=None):
    N, Cin, L = x.shape
    Cpc = int(weights[0].shape[0])

    T_list = [(L - k) // s + 1 for k, s in zip(kernels, strides)]
    a_len = T_list[-1]                       # pad target = last branch length

    if t_tile is None:
        t_tile = min(512, _round_up(a_len, 128))
    t_tile = max(128, _round_up(t_tile, 128))
    a_pad = _round_up(a_len, t_tile)         # lane-dense, 128-multiple output
    n_t = a_pad // t_tile

    outs = []
    for k, s, T, w, b in zip(kernels, strides, T_list, weights, biases):
        Kc = k * Cin

        # ---- wrapper glue: im2col (pure data rearrangement) -----------------
        l_need = (a_pad - 1) * s + k
        x_fit = jnp.pad(x, ((0, 0), (0, 0),
                            (0, max(0, l_need - L))))[:, :, :l_need]
        taps = [x_fit[:, :, j: j + (a_pad - 1) * s + 1: s] for j in range(k)]
        x_unf = (jnp.stack(taps, axis=1)                 # (N, k, Cin, a_pad)
                 .reshape(N, Kc, a_pad)
                 .astype(jnp.bfloat16))
        w_mat = w.transpose(0, 2, 1).reshape(Cpc, Kc).astype(jnp.bfloat16)
        b_col = b.reshape(Cpc, 1).astype(jnp.float32)

        kern = _make_branch_kernel(Cpc, t_tile, T)
        flops = int(2 * N * Cpc * Kc * a_pad)
        bytes_accessed = int(N * Kc * a_pad * 2 + Cpc * Kc * 2 + Cpc * 4
                             + N * Cpc * a_pad * x.dtype.itemsize)

        out = pl.pallas_call(
            kern,
            out_shape=jax.ShapeDtypeStruct((N, Cpc, a_pad), x.dtype),
            grid_spec=pltpu.PrefetchScalarGridSpec(
                num_scalar_prefetch=0,
                grid=(N, n_t),
                in_specs=[
                    pl.BlockSpec((1, Kc, t_tile), lambda n, t: (n, 0, t)),
                    pl.BlockSpec((Cpc, Kc), lambda n, t: (0, 0)),
                    pl.BlockSpec((Cpc, 1), lambda n, t: (0, 0)),
                ],
                out_specs=pl.BlockSpec((1, Cpc, t_tile), lambda n, t: (n, 0, t)),
            ),
            compiler_params=pltpu.CompilerParams(
                dimension_semantics=("parallel", "parallel"),
                vmem_limit_bytes=32 * 1024 * 1024,
            ),
            cost_estimate=pl.CostEstimate(
                flops=flops, transcendentals=0, bytes_accessed=bytes_accessed),
        )(x_unf, w_mat, b_col)

        outs.append(out[:, :, :a_len])

    return jnp.concatenate(outs, axis=1)     # torch.cat(..., dim=1)


# ----------------------------------------------------------------------------
# Pure-JAX reference (for correctness check)
# ----------------------------------------------------------------------------
def multires_reference(x, kernels, strides, weights, biases):
    outs = []
    for k, s, w, b in zip(kernels, strides, weights, biases):
        y = jax.lax.conv_general_dilated(
            x, w, window_strides=(s,), padding="VALID",
            dimension_numbers=("NCH", "OIH", "NCH"))
        y = jnp.maximum(y + b[None, :, None], 0.0)
        outs.append(y)
    a_len = outs[-1].shape[-1]
    outs = [jnp.pad(y, ((0, 0), (0, 0), (0, a_len - y.shape[-1]))) for y in outs]
    return jnp.concatenate(outs, axis=1)


# ----------------------------------------------------------------------------
if __name__ == "__main__":
    # Small config consistent with the module:
    #   n_conv=2, n_out_channels=8, in_channel=2
    #   kernel_size_range=(3, 9), stride_range=(1, 3)
    # -> kernels=[9, 3], strides=[3, 1]
    n_conv = 2
    n_out_channels = 8
    in_channel = 2
    seq_len = 64
    batch = 2

    key = jax.random.PRNGKey(0)
    key, k_params, k_x = jax.random.split(key, 3)

    kernels, strides, weights, biases = multires_init(
        k_params, n_conv, n_out_channels, in_channel,
        kernel_size_range=(3, 9), stride_range=(1, 3))

    x = jax.random.normal(k_x, (batch, in_channel, seq_len), jnp.float32)

    out = multires_forward(x, kernels, strides, weights, biases)
    out = jax.block_until_ready(out)

    ref = jax.block_until_ready(
        multires_reference(x, kernels, strides, weights, biases))

    assert out.shape == ref.shape, (out.shape, ref.shape)
    # bf16 inputs feeding the MXU (f32 accumulation) -> loosened tolerance
    # vs the f32 lax.conv reference.
    assert np.allclose(np.asarray(out), np.asarray(ref),
                       rtol=5e-2, atol=5e-2), "mismatch vs reference"

    print("KERNEL_OK")
</pallas_src>

<mosaic_0001>
module attributes {stable_mosaic.version = 11 : i64} {
  func.func @kernel(%arg0: i32, %arg1: i32, %arg2: memref<1x18x128xbf16, #tpu.memory_space<vmem>>, %arg3: memref<4x18xbf16, #tpu.memory_space<vmem>>, %arg4: memref<4x1xf32, #tpu.memory_space<vmem>>, %arg5: memref<1x4x128xf32, #tpu.memory_space<vmem>>) attributes {dimension_semantics = [#tpu.dimension_semantics<parallel>, #tpu.dimension_semantics<parallel>], iteration_bounds = array<i64: 2, 1>, scalar_prefetch = 0 : i64, scratch_operands = 0 : i64, tpu.core_type = #tpu.core_type<tc>, window_params = [{transform_indices = @transform_0, window_bounds = array<i64: 1, 18, 128>}, {pipeline_mode = #tpu.pipeline_mode<synchronous>, transform_indices = @transform_1, window_bounds = array<i64: 4, 18>}, {pipeline_mode = #tpu.pipeline_mode<synchronous>, transform_indices = @transform_2, window_bounds = array<i64: 4, 1>}, {transform_indices = @transform_3, window_bounds = array<i64: 1, 4, 128>}]} {
    %c128_i32 = arith.constant 128 : i32
    %0 = arith.muli %arg1, %c128_i32 : i32
    %1 = tpu.assume_multiple %0, 128 : i32
    %c19_i32 = arith.constant 19 : i32
    %2 = arith.cmpi slt, %1, %c19_i32 : i32
    %3 = arith.extui %2 : i1 to i32
    %c0_i32 = arith.constant 0 : i32
    %4 = arith.cmpi ne, %3, %c0_i32 : i32
    scf.if %4 {
      %c0 = arith.constant 0 : index
      %c0_2 = arith.constant 0 : index
      %8 = vector.load %arg3[%c0, %c0_2] : memref<4x18xbf16, #tpu.memory_space<vmem>>, vector<4x18xbf16>
      %c0_3 = arith.constant 0 : index
      %c0_4 = arith.constant 0 : index
      %c0_5 = arith.constant 0 : index
      %9 = vector.load %arg2[%c0_3, %c0_4, %c0_5] : memref<1x18x128xbf16, #tpu.memory_space<vmem>>, vector<1x18x128xbf16>
      %10 = vector.shape_cast %9 : vector<1x18x128xbf16> to vector<18x128xbf16>
      %cst = arith.constant dense<0.000000e+00> : vector<4x128xf32>
      %11 = tpu.matmul %8, %10, %cst {dimension_numbers = #tpu.dot_dimension_numbers<[1], [0], [0], [1], [0, 0, 1, 1], [], []>} : vector<4x18xbf16>, vector<18x128xbf16>, vector<4x128xf32> -> vector<4x128xf32>
      %c0_6 = arith.constant 0 : index
      %c0_7 = arith.constant 0 : index
      %12 = vector.load %arg4[%c0_6, %c0_7] : memref<4x1xf32, #tpu.memory_space<vmem>>, vector<4x1xf32>
      %13 = vector.broadcast %12 : vector<4x1xf32> to vector<4x128xf32>
      %14 = arith.addf %11, %13 : vector<4x128xf32>
      %cst_8 = arith.constant 0.000000e+00 : f32
      %15 = vector.broadcast %cst_8 : f32 to vector<4x128xf32>
      %16 = arith.maximumf %14, %15 : vector<4x128xf32>
      %17 = tpu.iota {dimensions = array<i32: 1>} : vector<4x128xi32>
      %18 = vector.broadcast %1 : i32 to vector<4x128xi32>
      %19 = arith.addi %17, %18 : vector<4x128xi32>
      %c19_i32_9 = arith.constant 19 : i32
      %20 = vector.broadcast %c19_i32_9 : i32 to vector<4x128xi32>
      %21 = arith.cmpi slt, %19, %20 : vector<4x128xi32>
      %cst_10 = arith.constant 0.000000e+00 : f32
      %22 = vector.broadcast %cst_10 : f32 to vector<4x128xf32>
      %23 = arith.select %21, %16, %22 : vector<4x128xi1>, vector<4x128xf32>
      %c0_11 = arith.constant 0 : index
      %c0_12 = arith.constant 0 : index
      %c0_13 = arith.constant 0 : index
      %24 = vector.load %arg5[%c0_11, %c0_12, %c0_13] : memref<1x4x128xf32, #tpu.memory_space<vmem>>, vector<1x4x128xf32>
      %25 = vector.shape_cast %24 : vector<1x4x128xf32> to vector<4x128xf32>
      %26 = vector.shape_cast %23 : vector<4x128xf32> to vector<1x4x128xf32>
      tpu.vector_store %arg5[%c0_11, %c0_12, %c0_13], %26 {strides = array<i32>} : memref<1x4x128xf32, #tpu.memory_space<vmem>>, vector<1x4x128xf32>,
    } else {
    }
    %c19_i32_0 = arith.constant 19 : i32
    %5 = arith.cmpi sge, %1, %c19_i32_0 : i32
    %6 = arith.extui %5 : i1 to i32
    %c0_i32_1 = arith.constant 0 : i32
    %7 = arith.cmpi ne, %6, %c0_i32_1 : i32
    scf.if %7 {
      %cst = arith.constant 0.000000e+00 : f32
      %8 = vector.broadcast %cst : f32 to vector<4x128xf32>
      %c0 = arith.constant 0 : index
      %c0_2 = arith.constant 0 : index
      %c0_3 = arith.constant 0 : index
      %9 = vector.load %arg5[%c0, %c0_2, %c0_3] : memref<1x4x128xf32, #tpu.memory_space<vmem>>, vector<1x4x128xf32>
      %10 = vector.shape_cast %9 : vector<1x4x128xf32> to vector<4x128xf32>
      %11 = vector.shape_cast %8 : vector<4x128xf32> to vector<1x4x128xf32>
      tpu.vector_store %arg5[%c0, %c0_2, %c0_3], %11 {strides = array<i32>} : memref<1x4x128xf32, #tpu.memory_space<vmem>>, vector<1x4x128xf32>,
    } else {
    }
    return
  }
  func.func @transform_0(%arg0: i32, %arg1: i32) -> (i32, i32, i32) {
    %c0_i32 = arith.constant 0 : i32
    %c0_i32_0 = arith.constant 0 : i32
    return %arg0, %c0_i32, %arg1 : i32, i32, i32
  }
  func.func @transform_1(%arg0: i32, %arg1: i32) -> (i32, i32) {
    %c0_i32 = arith.constant 0 : i32
    %c0_i32_0 = arith.constant 0 : i32
    %c0_i32_1 = arith.constant 0 : i32
    return %c0_i32, %c0_i32_0 : i32, i32
  }
  func.func @transform_2(%arg0: i32, %arg1: i32) -> (i32, i32) {
    %c0_i32 = arith.constant 0 : i32
    %c0_i32_0 = arith.constant 0 : i32
    %c0_i32_1 = arith.constant 0 : i32
    return %c0_i32, %c0_i32_0 : i32, i32
  }
  func.func @transform_3(%arg0: i32, %arg1: i32) -> (i32, i32, i32) {
    %c0_i32 = arith.constant 0 : i32
    %c0_i32_0 = arith.constant 0 : i32
    return %arg0, %c0_i32, %arg1 : i32, i32, i32
  }
}

</mosaic_0001>

<bundles_post_ra>
// kernel: tpu_custom_call.1
= control target key start
LH: loop header
LB: loop body
LE: loop exit
PB: predicated region body
PF: predicated region fallthrough
CT: control target
= control target key end

     0   :  { %8 = vsyncpa [#allocation3], 0  ;;  %s675_s0 = inlined_call_operand.vmem [shape: bf16[2,18,128], index: 0, kind: input, shape index: {}]   ;;  %s676_s1 = inlined_call_operand.vmem [shape: bf16[4,18], index: 1, kind: input, shape index: {}]   ;;  %s677_s2 = inlined_call_operand.vmem [shape: f32[4,1], index: 2, kind: input, shape index: {}]   ;;  %s678_s3 = inlined_call_operand.hbm [shape: f32[2,4,128], index: 3, kind: output, shape index: {}]  }
   0x1   :  { %10 = vsyncpa [#allocation3 + $0x1], 0  ;;  %s558_s12 = smov 0   ;;  %s560_s13 = smov 0  }
   0x2   :  { %s562_s14 = smov 0   ;;  %s564_s15 = smov 0  }
   0x3   :  { %s566_s16 = smov 0   ;;  %s568_s17 = smov 0  }
   0x4 LB: > { %s369_s18 = sadd.s32 4294967295, %s532_s17   ;;  %s370_s19 = sadd.s32 4294967294, %s532_s17   ;;  %s532_s17 = sphi %s568_s17, %s16_s17   ;;  %s528_s16 = sphi %s566_s16, %s685_s16   ;;  %s524_s15 = sphi %s564_s15, %s684_s15   ;;  %s520_s14 = sphi %s562_s14, %s683_s14   ;;  %s516_s13 = sphi %s560_s13, %s682_s13   ;;  %s512_s12 = sphi %s558_s12, %s681_s12  }
   0x5   : > { %s28_s20 = sadd.s32 1, %s528_s16  ;;  %s107_s21 = sadd.s32 1, %s520_s14 }
   0x6   : > { %p30_p0 = scmp.ge.s32.totalorder %s28_s20, 2  ;;  %p117_p1 = scmp.ne.s32.totalorder %s520_s14, %s516_s13 }
   0x7   : > { %p118_p2 = scmp.eq.s32.totalorder %s369_s18, 1  ;;  %p123_p3 = scmp.ne.s32.totalorder %s516_s13, %s512_s12 }
   0x8   : > { %s687_s20 = smov (%p30_p0, %s28_s20), 0  ;;  %p124_p5 = scmp.eq.s32.totalorder %s370_s19, 1 }
   0x9   : > { %p598_p4 = por %p118_p2, %p117_p1  ;;  %s102_s23 = ssub.s32 %s528_s16, %s687_s20 }
   0xa   : > { %p373_p6 = scmp.ge.s32.totalorder %s532_s17, 1  ;;  %p105_p7 = scmp.eq.s32.totalorder %s102_s23, 0 }
   0xb   : > { %p605_p8 = por %p124_p5, %p123_p3  ;;  %p159_p9 = scmp.lt.s32.totalorder %s532_s17, 3 }
   0xc   : > { %s611_s25 = scalar_select %p105_p7, %s520_s14, %s107_s21  }
   0xd   : > { %p160_p10 = pnand %p373_p6, %p159_p9 }
   0xe   : > { %p186_p11 = scmp.lt.s32.totalorder (!%p160_p10), %s524_s15, 1  ;;  %s183_s8 = sand.u32 (!%p160_p10), 1, %s516_s13  }
   0xf   : > { %163 = sbr.rel (%p160_p10) target bundleno = 245 (0xf5), region = 32  ;;  %s374_s9 = sshll.u32 (!%p160_p10), %s183_s8, 2 }
  0x10   : > { %s380_s10 = sshll.u32 (!%p160_p10), %s524_s15, 6  ;;  %s185_s11 = scalar_lea.vmem (!%p160_p10), [#allocation2], %s374_s9 }
  0x11   : > { %s295_s18 = sshll.u32 (!%p160_p10), %s185_s11, 4  ;;  %s629_s23 = scalar_lea.hbm (!%p160_p10), %s678_s3, %s380_s10  ;;  %s631_s18 = int_to_ptr.vmem [resolvable:$true] %s295_s18 }
  0x12   : > { %s456_s26 = scalar_lea.vmem (!%p160_p10), %s631_s18, 64  ;;  %s537_s27 = smov (!%p160_p10), [#allocation2]  }
  0x13   : > { %p457_p12 = scmp.ne.s32.totalorder (!%p160_p10), %s631_s18, %s456_s26 }
  0x14   : > { %v534_v0 = vmov 0.0   ;;  %vm535_vm0 = vmmov 0   ;;  %v204_v1 = vld [vmem:[%s677_s2] sm:$0xf]  ;;  %s187_s28 = scalar_select %p186_p11, %s524_s15, 1  ;;  %v536_v2 = vmov 0   ;;  %v268_v7 = vlaneseq }
  0x15   : > { %386 = vmatprep.subr.bf16.mxu0 %v534_v0  ;;  %390 = vmatprep.mubr.msk.bf16.mxu0 %vm535_vm0, %v534_v0  ;;  %vm223_vm1 = vcmask 1040384   ;;  %v200_v6 = vld [vmem:[%s676_s1] sm:$0x3]  ;;  %vm219_vm2 = vcmask 146432   ;;  %s281_s15 = scalar_lea.sflag [#allocation3], %s183_s8  ;;  %p458_p13 = pnand %p457_p12, %p598_p4 }
  0x16   : > { %453 = vset.pattern.permute.xlu0 %v536_v2  ;;  %s394_s29 = smul.u32 12, %s187_s28  ;;  %v269_v9 = vand.u32 127, %v268_v7  ;;  %s460_s28 = sshll.u32 %s537_s27, 4  ;;  %s461_s28 = int_to_ptr.vmem [resolvable:$false] %s460_s28 }
  0x17   : > { %207 = vperm.xlu0 %453, %v204_v1   ;;  %p459_p0 = pneg %p458_p13  ;;  %p463_p1 = scmp.lt.s32.totalorder %s631_s18, %s461_s28 }
  0x18   : > { %s193_s5 = scalar_lea.vmem %s675_s0, %s394_s29  ;;  %vm272_vm3 = vcmp.lt.s32.totalorder %v269_v9, 19  ;;  %s462_s29 = scalar_lea.vmem %s461_s28, 128 }
  0x19   : > { %v454_v3 = vld [vmem:[%s193_s5 + $0x8] ss:$0 sps:$4 sm:$0x11]   ;;  %v455_v5 = vld [vmem:[%s193_s5] sm:$0xff]   ;;  %p464_p2 = scmp.lt.s32.totalorder %s462_s29, %s456_s26 }
  0x1a   : > { %v225_v4 = vsel %vm223_vm1, %v454_v3, 0 }
  0x1b   : > { %387 = vmatpush3.bf16.msra.mxu0 %v225_v4  ;;  %p465_p3 = por %p464_p2, %p463_p1 }
  0x1c   : > { %388 = vmatprep.subr.bf16.mxu0 %v534_v0 }
  0x1d   : > { %p466_p5 = pnand %p465_p3, %p459_p0 }
  0x1f   : > { %389 = vmatpush3.bf16.msra.mxu0 %v455_v5 }
  0x22   : > { %391 = vmatmul.mubr.msk.bf16.vlgmr.msra.gmra.mxu0 %vm219_vm2, %v200_v6 }
  0x92   : > { %v208_v8 = vpop.permute.xlu0 %207 }
  0xe2   : > { %v261_v10 = vpop.f32.mrf.mxu0 }
  0xe3   : > { %v262_v11 = vadd.f32 %v261_v10, %v208_v8 }
  0xe4   : > { %v392_v12 = vpop.f32.mrf.mxu0 }
  0xe5   : > { %v267_v13 = vmax.f32 %v262_v11, 0.0 }
  0xe6   : > { %v264_v14 = vpop.f32.mrf.mxu0 }
  0xe7   : > { %v273_v15 = vsel %vm272_vm3, %v267_v13, 0.0 }
  0xe8   : > { %v393_v16 = vpop.f32.mrf.mxu0  ;;  %274 = vst [vmem:[%s185_s11] sm:$0xf] %v273_v15 }
  0xe9   : > { %469 = shalt.err (!%p466_p5)
}
  0xea   : > { %s470_s30 = scalar_lea.hbm %s629_s23, 64  ;;  %s474_s6 = scalar_lea.hbm %s678_s3, 128 }
  0xeb   : > { %p471_p6 = scmp.ne.s32.totalorder %s629_s23, %s470_s30  ;;  %p475_p10 = scmp.lt.s32.totalorder %s629_s23, %s678_s3 }
  0xec   : > { %p476_p11 = scmp.lt.s32.totalorder %s474_s6, %s470_s30 }
  0xed   : > { %p472_p7 = pnand %p471_p6, %p598_p4 }
  0xee   : > { %p477_p12 = por %p476_p11, %p475_p10 }
  0xef   : > { %p473_p9 = pneg %p472_p7 }
  0xf1   : > { %p478_p13 = pnand %p477_p12, %p473_p9 }
  0xf3   : > { %481 = shalt.err (!%p478_p13)
}
  0xf4   : > { %395 = dma.vmem_to_hbm [thread:$0]  (%p598_p4), %s631_s18, 64, %s629_s23, %s281_s15  }
  0xf5 PF: > { %p401_p0 = scmp.ge.s32.totalorder %s532_s17, 2  ;;  %s307_s9 = sand.u32 1, %s512_s12  }
  0xf6   : > { %s308_s10 = scalar_lea.sflag [#allocation3], %s307_s9 }
  0xf7   : > { %p398_p1 = pnand %p401_p0, %p605_p8 }
  0xf9   : > { %p399_p2 = pneg %p398_p1 }
  0xfb   : > { %507 = dma.done.wait (%p399_p2), %s308_s10, 64  }
  0xfc   : > { %509 = vsyncadd (%p399_p2), %s308_s10, 4294967232  ;;  %s16_s17 = sadd.s32 1, %s532_s17   ;;  %s681_s12 = smov %s516_s13 }
  0xfd   : > { %p13_p3 = scmp.ge.s32.totalorder %s16_s17, 4   ;;  %s682_s13 = smov %s520_s14 }
  0xfe   : > { %s683_s14 = smov %s611_s25  ;;  %s684_s15 = smov %s528_s16 }
  0xff   : > { %s685_s16 = smov %s687_s20  ;;  %15 = sbr.rel (!%p13_p3) target bundleno = 4 (0x4), region = 75 }
 0x104   :  { %313 = vsyncpa [#allocation3], 1 }
 0x105   :  { %315 = vsyncpa [#allocation3 + $0x1], 1 }

</bundles_post_ra>
